<compile_context>
chip_gen: v6e
topology: v6e:2x2x1
jax: 0.10.0
libtpu: 0.0.40
codegen_flags: <defaults>
</compile_context>

<pallas_src>
import functools

import jax
import jax.numpy as jnp
from jax.experimental import pallas as pl
from jax.experimental.pallas import tpu as pltpu

POSITIVE_WEIGHT = 1.0
NEGATIVE_WEIGHT = 7.0

_LANES = 128
_ROW_ALIGN = 8          # sublane alignment
_MAX_TILE_ROWS = 8192   # 8192 x 128 f32 = 4 MiB per input per pipeline buffer


def _num_tensorcores():
    """2 on v7x (2 TensorCores per chip), 1 on v5e/v6e."""
    try:
        kind = jax.devices()[0].device_kind.lower()
    except Exception:
        return 1
    return 2 if "v7" in kind else 1


def _wmse_kernel(out_ref, lab_ref, partial_ref, acc_ref, *,
                 pos_w, neg_w, tile_rows, m_rows, per_core, needs_mask):
    i = pl.program_id(1)

    @pl.when(i == 0)
    def _init():
        acc_ref[...] = jnp.zeros_like(acc_ref)

    o = out_ref[...].astype(jnp.float32)
    l = lab_ref[...].astype(jnp.float32)
    diff = o - l
    w = jnp.where(l > 0.5, jnp.float32(pos_w), jnp.float32(neg_w))
    val = w * diff * diff                                   # (tile_rows, 128) f32

    def _accumulate(v):
        if tile_rows % _ROW_ALIGN == 0:
            # Leading-axis reduce = pure VPU vreg adds into a single-vreg acc;
            # no XLU work and no multi-MiB accumulator RMW on the hot path.
            acc_ref[...] += v.reshape(
                tile_rows // _ROW_ALIGN, _ROW_ALIGN, _LANES).sum(axis=0)
        else:
            # Rare tiny single-block case (tile_rows == m_rows, not /8):
            # one cheap sublane reduce, executed exactly once.
            acc_ref[0:1, :] += jnp.sum(v, axis=0, keepdims=True)

    if needs_mask:
        blk = pl.program_id(0) * per_core + i     # logical (unclamped) block id
        full_blocks = m_rows // tile_rows         # blocks fully inside the array

        @pl.when(blk < full_blocks)
        def _hot():                               # steady state: no mask work
            _accumulate(val)

        @pl.when(blk >= full_blocks)
        def _edge():                              # ragged last block + phantoms
            row_ids = blk * tile_rows + jax.lax.broadcasted_iota(
                jnp.int32, (tile_rows, _LANES), 0)
            _accumulate(jnp.where(row_ids < m_rows, val, jnp.float32(0.0)))
    else:
        _accumulate(val)

    @pl.when(i == pl.num_programs(1) - 1)
    def _final():
        partial_ref[0, 0] = jnp.sum(acc_ref[...])


def _wmse_partial_sum(o2, l2, positive_weight, negative_weight):
    """Sum of weights * (o - l)^2 over an (m_rows, 128) slab, via Pallas."""
    m_rows = o2.shape[0]
    tile_rows = min(_MAX_TILE_ROWS, m_rows)       # == m_rows or a multiple of 8
    n_blocks = pl.cdiv(m_rows, tile_rows)

    # Device-aware core split: only pay for the extra grid axis where a second
    # TensorCore exists.  On v7x the leading "parallel" axis lets each TC
    # reduce half the blocks into its own partial sum.
    # TODO(synk): if "parallel" does not shard across v7x TCs, switch this axis
    # to pltpu.CORE_PARALLEL (or pl.core_map) once verified on hardware.
    num_cores = _num_tensorcores() if n_blocks >= 2 else 1
    per_core = pl.cdiv(n_blocks, num_cores)
    grid = (num_cores, per_core)
    needs_mask = (num_cores * per_core * tile_rows) != m_rows

    def _in_map(c, i):
        # Clamp so phantom / ragged blocks never issue an out-of-bounds DMA;
        # their contribution is zeroed by the in-kernel edge-block mask.
        return (jnp.minimum(c * per_core + i, n_blocks - 1), 0)

    kernel = functools.partial(
        _wmse_kernel,
        pos_w=float(positive_weight),
        neg_w=float(negative_weight),
        tile_rows=tile_rows,
        m_rows=m_rows,
        per_core=per_core,
        needs_mask=needs_mask,
    )

    n_elems = m_rows * _LANES
    cost = pl.CostEstimate(
        flops=5 * n_elems,
        transcendentals=0,
        bytes_accessed=n_elems * (o2.dtype.itemsize + l2.dtype.itemsize)
        + 4 * num_cores,
    )

    # Re-derived VMEM budget: double-buffered inputs + one-vreg acc + slack.
    # Floor of 32 MiB beats v5e's 16 MiB default scoped limit; 48 MiB cap
    # leaves headroom inside v7x's 64 MiB physical VMEM.
    in_block_bytes = tile_rows * _LANES * (o2.dtype.itemsize + l2.dtype.itemsize)
    vmem_need = 2 * in_block_bytes + _ROW_ALIGN * _LANES * 4
    vmem_limit = int(min(max(vmem_need + (4 << 20), 32 << 20), 48 << 20))

    partials = pl.pallas_call(
        kernel,
        out_shape=jax.ShapeDtypeStruct((num_cores, 1), jnp.float32),
        grid_spec=pltpu.PrefetchScalarGridSpec(
            num_scalar_prefetch=0,
            grid=grid,
            in_specs=[
                pl.BlockSpec((tile_rows, _LANES), _in_map),
                pl.BlockSpec((tile_rows, _LANES), _in_map),
            ],
            out_specs=pl.BlockSpec((1, 1), lambda c, i: (c, 0),
                                   memory_space=pltpu.SMEM),
            scratch_shapes=[pltpu.VMEM((_ROW_ALIGN, _LANES), jnp.float32)],
        ),
        compiler_params=pltpu.CompilerParams(
            dimension_semantics=("parallel", "arbitrary"),
            vmem_limit_bytes=vmem_limit),
        cost_estimate=cost,
    )(o2, l2)

    return jnp.sum(partials)


def weighted_mse_loss(outputs, labels,
                      positive_weight=POSITIVE_WEIGHT,
                      negative_weight=NEGATIVE_WEIGHT):
    assert outputs.shape == labels.shape
    n_true = outputs.size

    # Flatten in native dtype (reshape of a contiguous array is free).
    o_flat = jnp.ravel(outputs)
    l_flat = jnp.ravel(labels)

    n_main = (n_true // _LANES) * _LANES

    if n_main == 0:
        # Tiny input (< 128 elements): pad to a single (8, 128) tile; the copy
        # is negligible and padded positions (outputs == labels == 0) add 0.
        pad = _ROW_ALIGN * _LANES - n_true
        o2 = jnp.pad(o_flat, (0, pad)).reshape(_ROW_ALIGN, _LANES)
        l2 = jnp.pad(l_flat, (0, pad)).reshape(_ROW_ALIGN, _LANES)
        total = _wmse_partial_sum(o2, l2, positive_weight, negative_weight)
    else:
        if n_main == n_true:
            # Common case: no pad, no slice — a free reshape to (M, 128).
            o2 = o_flat.reshape(-1, _LANES)
            l2 = l_flat.reshape(-1, _LANES)
        else:
            # 128-aligned prefix goes through the kernel; the < 128-element
            # tail is folded in below with a tiny jnp expression.
            o2 = o_flat[:n_main].reshape(n_main // _LANES, _LANES)
            l2 = l_flat[:n_main].reshape(n_main // _LANES, _LANES)

        total = _wmse_partial_sum(o2, l2, positive_weight, negative_weight)

        if n_main != n_true:
            ot = o_flat[n_main:].astype(jnp.float32)
            lt = l_flat[n_main:].astype(jnp.float32)
            wt = jnp.where(lt > 0.5, jnp.float32(positive_weight),
                           jnp.float32(negative_weight))
            total = total + jnp.sum(wt * (ot - lt) ** 2)

    return total / jnp.float32(n_true)


def weighted_mse_loss_ref(outputs, labels,
                          positive_weight=POSITIVE_WEIGHT,
                          negative_weight=NEGATIVE_WEIGHT):
    l = labels.astype(jnp.float32)
    o = outputs.astype(jnp.float32)
    w = jnp.where(l > 0.5, positive_weight, negative_weight)
    return jnp.mean(w * (o - l) ** 2)


if __name__ == "__main__":
    key = jax.random.PRNGKey(0)
    k1, k2 = jax.random.split(key)
    # Small shapes consistent with the module's usage (NCHW-like tensors).
    shape = (2, 4, 16, 16)
    outputs = jax.random.normal(k1, shape, dtype=jnp.float32)
    labels = jax.random.uniform(k2, shape, dtype=jnp.float32)  # in [0, 1)

    loss = weighted_mse_loss(outputs, labels)
    loss = jax.block_until_ready(loss)

    ref = weighted_mse_loss_ref(outputs, labels)
    assert jnp.allclose(loss, ref, rtol=1e-5, atol=1e-5), (loss, ref)
    print("KERNEL_OK")
</pallas_src>

<mosaic_0001>
module attributes {stable_mosaic.version = 11 : i64} {
  func.func @_wmse_kernel(%arg0: i32, %arg1: i32, %arg2: memref<16x128xf32, #tpu.memory_space<vmem>>, %arg3: memref<16x128xf32, #tpu.memory_space<vmem>>, %arg4: memref<1x1xf32, #tpu.memory_space<smem>>, %arg5: memref<8x128xf32, #tpu.memory_space<vmem>>) attributes {dimension_semantics = [#tpu.dimension_semantics<parallel>, #tpu.dimension_semantics<arbitrary>], iteration_bounds = array<i64: 1, 1>, scalar_prefetch = 0 : i64, scratch_operands = 1 : i64, tpu.core_type = #tpu.core_type<tc>, window_params = [{transform_indices = @transform_0, window_bounds = array<i64: 16, 128>}, {transform_indices = @transform_1, window_bounds = array<i64: 16, 128>}, {transform_indices = @transform_2, window_bounds = array<i64: 1, 1>}]} {
    %c0_i32 = arith.constant 0 : i32
    %0 = arith.cmpi eq, %arg1, %c0_i32 : i32
    %1 = arith.extui %0 : i1 to i32
    %c0_i32_0 = arith.constant 0 : i32
    %2 = arith.cmpi ne, %1, %c0_i32_0 : i32
    scf.if %2 {
      %cst_13 = arith.constant 0.000000e+00 : f32
      %21 = vector.broadcast %cst_13 : f32 to vector<8x128xf32>
      %c0_14 = arith.constant 0 : index
      %c0_15 = arith.constant 0 : index
      %22 = vector.load %arg5[%c0_14, %c0_15] : memref<8x128xf32, #tpu.memory_space<vmem>>, vector<8x128xf32>
      tpu.vector_store %arg5[%c0_14, %c0_15], %21 {strides = array<i32>} : memref<8x128xf32, #tpu.memory_space<vmem>>, vector<8x128xf32>,
    } else {
    }
    %c0 = arith.constant 0 : index
    %c0_1 = arith.constant 0 : index
    %3 = vector.load %arg2[%c0, %c0_1] : memref<16x128xf32, #tpu.memory_space<vmem>>, vector<16x128xf32>
    %c0_2 = arith.constant 0 : index
    %c0_3 = arith.constant 0 : index
    %4 = vector.load %arg3[%c0_2, %c0_3] : memref<16x128xf32, #tpu.memory_space<vmem>>, vector<16x128xf32>
    %5 = arith.subf %3, %4 : vector<16x128xf32>
    %cst = arith.constant 5.000000e-01 : f32
    %6 = vector.broadcast %cst : f32 to vector<16x128xf32>
    %7 = arith.cmpf ogt, %4, %6 : vector<16x128xf32>
    %cst_4 = arith.constant 1.000000e+00 : f32
    %cst_5 = arith.constant 7.000000e+00 : f32
    %8 = vector.broadcast %cst_4 : f32 to vector<16x128xf32>
    %9 = vector.broadcast %cst_5 : f32 to vector<16x128xf32>
    %10 = arith.select %7, %8, %9 : vector<16x128xi1>, vector<16x128xf32>
    %11 = arith.mulf %10, %5 : vector<16x128xf32>
    %12 = arith.mulf %11, %5 : vector<16x128xf32>
    %c0_6 = arith.constant 0 : index
    %c0_7 = arith.constant 0 : index
    %13 = vector.load %arg5[%c0_6, %c0_7] : memref<8x128xf32, #tpu.memory_space<vmem>>, vector<8x128xf32>
    %14 = vector.shape_cast %12 : vector<16x128xf32> to vector<2x8x128xf32>
    %cst_8 = arith.constant dense<0.000000e+00> : vector<8x128xf32>
    %15 = vector.multi_reduction <add>, %14, %cst_8 [0] : vector<2x8x128xf32> to vector<8x128xf32>
    %16 = arith.addf %13, %15 : vector<8x128xf32>
    %c0_9 = arith.constant 0 : index
    %c0_10 = arith.constant 0 : index
    %17 = vector.load %arg5[%c0_9, %c0_10] : memref<8x128xf32, #tpu.memory_space<vmem>>, vector<8x128xf32>
    tpu.vector_store %arg5[%c0_9, %c0_10], %16 {strides = array<i32>} : memref<8x128xf32, #tpu.memory_space<vmem>>, vector<8x128xf32>,
    %c0_i32_11 = arith.constant 0 : i32
    %18 = arith.cmpi eq, %arg1, %c0_i32_11 : i32
    %19 = arith.extui %18 : i1 to i32
    %c0_i32_12 = arith.constant 0 : i32
    %20 = arith.cmpi ne, %19, %c0_i32_12 : i32
    scf.if %20 {
      %c0_13 = arith.constant 0 : index
      %c0_14 = arith.constant 0 : index
      %21 = vector.load %arg5[%c0_13, %c0_14] : memref<8x128xf32, #tpu.memory_space<vmem>>, vector<8x128xf32>
      %22 = vector.shape_cast %21 : vector<8x128xf32> to vector<1x8x128xf32>
      %cst_15 = arith.constant dense<0.000000e+00> : vector<1xf32>
      %23 = vector.multi_reduction <add>, %22, %cst_15 [1, 2] : vector<1x8x128xf32> to vector<1xf32>
      %24 = vector.shape_cast %23 : vector<1xf32> to vector<1x1x1xf32>
      %25 = vector.extract %24[0, 0, 0] : f32 from vector<1x1x1xf32>
      %c0_16 = arith.constant 0 : index
      %c0_17 = arith.constant 0 : index
      %26 = memref.load %arg4[%c0_16, %c0_17] : memref<1x1xf32, #tpu.memory_space<smem>>
      memref.store %25, %arg4[%c0_16, %c0_17] : memref<1x1xf32, #tpu.memory_space<smem>>
    } else {
    }
    return
  }
  func.func @transform_0(%arg0: i32, %arg1: i32) -> (i32, i32) {
    %c1_i32 = arith.constant 1 : i32
    %0 = arith.muli %arg0, %c1_i32 : i32
    %1 = arith.addi %0, %arg1 : i32
    %c0_i32 = arith.constant 0 : i32
    %2 = arith.minsi %1, %c0_i32 : i32
    %c0_i32_0 = arith.constant 0 : i32
    %c0_i32_1 = arith.constant 0 : i32
    return %2, %c0_i32_0 : i32, i32
  }
  func.func @transform_1(%arg0: i32, %arg1: i32) -> (i32, i32) {
    %c1_i32 = arith.constant 1 : i32
    %0 = arith.muli %arg0, %c1_i32 : i32
    %1 = arith.addi %0, %arg1 : i32
    %c0_i32 = arith.constant 0 : i32
    %2 = arith.minsi %1, %c0_i32 : i32
    %c0_i32_0 = arith.constant 0 : i32
    %c0_i32_1 = arith.constant 0 : i32
    return %2, %c0_i32_0 : i32, i32
  }
  func.func @transform_2(%arg0: i32, %arg1: i32) -> (i32, i32) {
    %c0_i32 = arith.constant 0 : i32
    %c0_i32_0 = arith.constant 0 : i32
    return %arg0, %c0_i32 : i32, i32
  }
}

</mosaic_0001>

<bundles_post_ra>
// kernel: tpu_custom_call.1
= control target key start
LH: loop header
LB: loop body
LE: loop exit
PB: predicated region body
PF: predicated region fallthrough
CT: control target
= control target key end

     0   :  { %7 = vsyncpa [#allocation4], 0  ;;  %s209_s0 = inlined_call_operand.hbm [shape: f32[16,128], index: 0, kind: input, shape index: {}]   ;;  %s210_s1 = inlined_call_operand.hbm [shape: f32[16,128], index: 1, kind: input, shape index: {}]   ;;  %s211_s2 = inlined_call_operand.hbm [shape: f32[1,1], index: 2, kind: output, shape index: {}]  }
   0x1   :  { %8 = vsyncpa [#allocation7], 0 }
   0x2   :  { %9 = vsyncpa [#allocation5], 0  ;;  %s179_s9 = smov [#allocation3]  }
   0x3   :  { %s21_s10 = sshll.u32 %s179_s9, 4  ;;  %s22_s10 = int_to_ptr.vmem [resolvable:$true] %s21_s10 }
   0x4   :  { %s133_s11 = scalar_lea.vmem %s22_s10, 256  ;;  %p138_p1 = scmp.lt.s32.totalorder %s22_s10, %s22_s10 }
   0x5   :  { %p134_p0 = scmp.ne.s32.totalorder %s22_s10, %s133_s11  ;;  %p139_p2 = scmp.lt.s32.totalorder %s133_s11, %s133_s11 }
   0x7   :  { %p140_p3 = por %p139_p2, %p138_p1 }
   0x9   :  { %p141_p4 = pnand %p140_p3, %p134_p0 }
   0xb   :  { %144 = shalt.err (!%p141_p4)
}
   0xc   :  { %s180_s12 = smov 128   ;;  %s181_s13 = smov 8  }
   0xd   :  { %27 = dma.hbm_to_vmem [thread:$0]  %s209_s0, 256, %s22_s10, [#allocation4], %s180_s12, %s180_s12, %s181_s13  }
   0xe   :  { %s182_s16 = smov [#allocation6]  }
   0xf   :  { %s39_s17 = sshll.u32 %s182_s16, 4  ;;  %s40_s17 = int_to_ptr.vmem [resolvable:$true] %s39_s17 }
  0x10   :  { %s153_s18 = scalar_lea.vmem %s40_s17, 256  ;;  %p158_p6 = scmp.lt.s32.totalorder %s40_s17, %s40_s17 }
  0x11   :  { %p154_p5 = scmp.ne.s32.totalorder %s40_s17, %s153_s18  ;;  %p159_p7 = scmp.lt.s32.totalorder %s153_s18, %s153_s18 }
  0x13   :  { %p160_p8 = por %p159_p7, %p158_p6 }
  0x15   :  { %p161_p9 = pnand %p160_p8, %p154_p5 }
  0x17   :  { %164 = shalt.err (!%p161_p9)
}
  0x18   :  { %45 = dma.hbm_to_vmem [thread:$0]  %s210_s1, 256, %s40_s17, [#allocation7], %s180_s12, %s180_s12, %s181_s13  }
  0x19   :  { %173 = dma.done.wait [#allocation4], 256  }
  0x1a   :  { %174 = vsyncadd [#allocation4], 4294967040 }
  0x1b   :  { %175 = dma.done.wait [#allocation7], 256  }
  0x1c   :  { %176 = vsyncadd [#allocation7], 4294967040  ;;  %v65_v0 = vld [vmem:[#allocation3] sm:$0xff]  ;;  %v66_v1 = vld [vmem:[#allocation3 + $0x8] sm:$0xff]  ;;  %v183_v6 = vmov 7.0   ;;  %s184_s1 = smov [#allocation8]  }
  0x1d   :  { %v67_v2 = vld [vmem:[#allocation6] sm:$0xff]  ;;  %v68_v3 = vld [vmem:[#allocation6 + $0x8] sm:$0xff] }
  0x1e   :  { %v69_v4 = vsub.f32 %v65_v0, %v67_v2  ;;  %vm71_vm0 = vcmp.gt.f32.partialorder %v67_v2, 0.5  ;;  %v70_v5 = vsub.f32 %v66_v1, %v68_v3  ;;  %vm72_vm1 = vcmp.gt.f32.partialorder %v68_v3, 0.5 }
  0x1f   :  { %v73_v7 = vsel %vm71_vm0, 1.0, %v183_v6  ;;  %v74_v8 = vsel %vm72_vm1, 1.0, %v183_v6 }
  0x20   :  { %v75_v9 = vmul.f32 %v73_v7, %v69_v4  ;;  %v76_v10 = vmul.f32 %v74_v8, %v70_v5 }
  0x22   :  { %v77_v11 = vmul.f32 %v75_v9, %v69_v4  ;;  %v78_v12 = vmul.f32 %v76_v10, %v70_v5 }
  0x24   :  { %v80_v13 = vadd.f32 %v78_v12, %v77_v11 }
  0x26   :  { %87 = vadd.xlane.f32.xlu0 %v80_v13 }
  0xaf   :  { %v88_v14 = vpop.xlane.xlu0 %87 }
  0xb0   :  { %v89_v15 = vrot.slane %v88_v14, 4 }
  0xb2   :  { %v90_v16 = vadd.f32 %v89_v15, %v88_v14 }
  0xb4   :  { %v91_v17 = vrot.slane %v90_v16, 2 }
  0xb6   :  { %v92_v18 = vadd.f32 %v91_v17, %v90_v16 }
  0xb8   :  { %v93_v19 = vrot.slane %v92_v18, 1 }
  0xba   :  { %v94_v20 = vadd.f32 %v93_v19, %v92_v18 }
  0xbc   :  { %117 = vpush %v94_v20 }
  0xed   :  { %s118_s0 = spop %117 }
  0xee   :  { %97 = sst [smem:[#allocation8]] %s118_s0 }
  0xef   :  { %105 = dma.smem_to_hbm %s184_s1, 16, %s211_s2, [#allocation5]  }
  0xf0   :  { %177 = dma.done.wait [#allocation5], 16  }
  0xf1   :  { %178 = vsyncadd [#allocation5], 4294967280 }
  0xf2   :  { %109 = sfence }
  0xf3   :  { %110 = vsyncpa [#allocation4], 1 }
  0xf4   :  { %111 = vsyncpa [#allocation7], 1 }
  0xf5   :  { %112 = vsyncpa [#allocation5], 1 }

</bundles_post_ra>
